<compile_context>
chip_gen: v7x
topology: tpu7x:2x2x1
jax: 0.10.0
libtpu: 0.0.40
codegen_flags: <defaults>
</compile_context>

<pallas_src>
import functools

import jax
import jax.numpy as jnp
from jax import lax
from jax.experimental import pallas as pl
from jax.experimental.pallas import tpu as pltpu

# ----------------------------- config -------------------------------------
B = 2            # batch
T = 4            # time (frames)
C = 3            # image channels
HW_IMG = 16      # spatial H = W
FEAT = 256       # stand-in for cnn_last_size (=1536 in the real module)
HID = 32         # stand-in for hidden_size (=300 in the real module)
NUM_LAYERS = 3
NUM_CLASSES = 2
KSIZE = 3        # stem conv kernel
K_RAW = C * KSIZE * KSIZE        # 27 im2col channels
K_PAD = 32                       # contraction dim padded to sublane multiple
HW = HW_IMG * HW_IMG             # 256 spatial positions per frame


# ------------------------- Pallas kernel bodies ----------------------------
def conv_pool_kernel(p_ref, w_ref, b_ref, o_ref):
    """Fused im2col conv matmul + swish + AdaptiveAvgPool2d(1) for one frame.

    p:(1,HW,K_PAD) bf16   w:(K_PAD,FEAT) bf16   b:(1,FEAT) f32
    o:(1,1,FEAT) bf16  — pooled feature row for this frame.
    """
    acc = jnp.dot(p_ref[0], w_ref[...],
                  preferred_element_type=jnp.float32)         # (HW, FEAT) f32
    acc = acc + b_ref[...]
    act = acc * jax.nn.sigmoid(acc)                           # swish
    o_ref[0] = jnp.mean(act, axis=0, keepdims=True).astype(o_ref.dtype)


def lstm_stack_pool_fc_kernel(x_ref, wih0_ref, wihr_ref, whh_ref, b_ref,
                              fcw_ref, fcb_ref, logits_ref, seq_a, seq_b, *,
                              hidden, num_layers, t_len, batch):
    """3-layer biLSTM + temporal avg-pool + final Linear, one fused kernel.

    x:(T*B, FEAT) bf16, t-major rows.  VMEM-resident weights:
      wih0:(2,FEAT,4H)  wihr:(L-1,2,2H,4H)  whh:(L,2,H,4H)   (bf16, W^T)
      b:(L,2,1,4H) f32 (b_ih + b_hh)    fcw:(2H,NC) fcb:(1,NC) f32
    PyTorch gate order i,f,g,o.  Inter-layer sequences ping-pong between two
    (T*B, 2H) f32 VMEM scratch buffers (never hit HBM).
    """
    four_h = 4 * hidden
    lanes = lax.broadcasted_iota(jnp.int32, (batch, four_h), 1)
    g_mask = (lanes // hidden) == 2       # tanh on g lanes, sigmoid otherwise

    def cell(gx_t, h, c, whh):
        gates = gx_t + jnp.dot(h.astype(jnp.bfloat16), whh,
                               preferred_element_type=jnp.float32)
        act = jnp.where(g_mask, jnp.tanh(gates), jax.nn.sigmoid(gates))
        i_g = act[:, 0 * hidden:1 * hidden]
        f_g = act[:, 1 * hidden:2 * hidden]
        g_g = act[:, 2 * hidden:3 * hidden]
        o_g = act[:, 3 * hidden:4 * hidden]
        c_new = f_g * c + i_g * g_g
        h_new = o_g * jnp.tanh(c_new)
        return h_new, c_new

    bufs = (seq_a, seq_b)
    for layer in range(num_layers):
        if layer == 0:
            x2d = x_ref[...]                                   # (T*B, FEAT)
        else:
            x2d = bufs[(layer - 1) % 2][...].astype(jnp.bfloat16)
        out_buf = bufs[layer % 2]
        for d in range(2):                                     # 0=fwd, 1=bwd
            wih = wih0_ref[d] if layer == 0 else wihr_ref[layer - 1, d]
            whh = whh_ref[layer, d]
            # hoisted input projection: one matmul covers all timesteps
            gx = jnp.dot(x2d, wih, preferred_element_type=jnp.float32)
            gx = gx + b_ref[layer, d]                          # (T*B, 4H) f32
            h = jnp.zeros((batch, hidden), jnp.float32)
            c = jnp.zeros((batch, hidden), jnp.float32)
            for s in range(t_len):                             # fully unrolled
                t = s if d == 0 else t_len - 1 - s
                h, c = cell(gx[t * batch:(t + 1) * batch, :], h, c, whh)
                out_buf[t * batch:(t + 1) * batch,
                        d * hidden:(d + 1) * hidden] = h

    # AdaptiveAvgPool1d(1) over time + final Linear, fused in the tail.
    final = bufs[(num_layers - 1) % 2]
    pooled = final[0:batch, :]
    for t in range(1, t_len):
        pooled = pooled + final[t * batch:(t + 1) * batch, :]
    pooled = pooled * (1.0 / t_len)                            # (B, 2H) f32
    logits = jnp.dot(pooled, fcw_ref[...],
                     preferred_element_type=jnp.float32) + fcb_ref[...]
    logits_ref[...] = logits.astype(logits_ref.dtype)


# ----------------------------- wrappers ------------------------------------
def conv_pool_features(patches, conv_w, conv_b):
    """patches:(T*B, HW, K_PAD) bf16 -> (T*B, FEAT) bf16 pooled features."""
    tb = patches.shape[0]
    feat = conv_w.shape[1]
    out = pl.pallas_call(
        conv_pool_kernel,
        out_shape=jax.ShapeDtypeStruct((tb, 1, feat), jnp.bfloat16),
        grid=(tb,),
        in_specs=[
            pl.BlockSpec((1, HW, K_PAD), lambda i: (i, 0, 0)),
            pl.BlockSpec((K_PAD, feat), lambda i: (0, 0)),
            pl.BlockSpec((1, feat), lambda i: (0, 0)),
        ],
        out_specs=pl.BlockSpec((1, 1, feat), lambda i: (i, 0, 0)),
        compiler_params=pltpu.CompilerParams(
            dimension_semantics=("parallel",)),        # shards frames on v7x
    )(patches, conv_w, conv_b)
    return out.reshape(tb, feat)


def lstm_stack_pool_fc(x2d, wih0, wihr, whh, b, fc_w, fc_b, *, hidden,
                       num_layers, t_len, batch, num_classes):
    kernel = functools.partial(lstm_stack_pool_fc_kernel, hidden=hidden,
                               num_layers=num_layers, t_len=t_len, batch=batch)
    return pl.pallas_call(
        kernel,
        out_shape=jax.ShapeDtypeStruct((batch, num_classes), jnp.float32),
        scratch_shapes=[
            pltpu.VMEM((t_len * batch, 2 * hidden), jnp.float32),
            pltpu.VMEM((t_len * batch, 2 * hidden), jnp.float32),
        ],
    )(x2d, wih0, wihr, whh, b, fc_w, fc_b)


# --------------------------- parameter init --------------------------------
def init_params(key):
    params = {}
    k_iter = iter(jax.random.split(key, 64))

    def normal(shape, scale=0.05):
        return scale * jax.random.normal(next(k_iter), shape, jnp.float32)

    # stem conv (stand-in for EfficientNet); contraction dim zero-padded
    # K_RAW(=27) -> K_PAD(=32) so the MXU sees a tiling-friendly LHS.
    conv_w = jnp.pad(normal((K_RAW, FEAT)), ((0, K_PAD - K_RAW), (0, 0)))
    params["conv_w"] = conv_w.astype(jnp.bfloat16)
    params["conv_b"] = normal((1, FEAT))                       # f32

    # 3-layer bidirectional LSTM, stacked per-(layer, direction).
    wih0 = jnp.stack([normal((FEAT, 4 * HID)) for _ in range(2)])
    wihr = jnp.stack([
        jnp.stack([normal((2 * HID, 4 * HID)) for _ in range(2)])
        for _ in range(NUM_LAYERS - 1)])
    whh = jnp.stack([
        jnp.stack([normal((HID, 4 * HID)) for _ in range(2)])
        for _ in range(NUM_LAYERS)])
    bias = jnp.stack([
        jnp.stack([normal((1, 4 * HID)) for _ in range(2)])
        for _ in range(NUM_LAYERS)])
    params["lstm_wih0"] = wih0.astype(jnp.bfloat16)   # (2, FEAT, 4H)
    params["lstm_wihr"] = wihr.astype(jnp.bfloat16)   # (L-1, 2, 2H, 4H)
    params["lstm_whh"] = whh.astype(jnp.bfloat16)     # (L, 2, H, 4H)
    params["lstm_b"] = bias                           # (L, 2, 1, 4H) f32

    # final classifier
    params["fc_w"] = normal((2 * HID, NUM_CLASSES))
    params["fc_b"] = normal((1, NUM_CLASSES))
    return params


# ------------------------------ forward ------------------------------------
def trunc_efficient_lstm_forward(images, params):
    batch, time, chans, h, w = images.shape

    # --- per-frame CNN features ---
    # frames laid out t-major so pooled features land directly in (T, B) row
    # order for the LSTM (no transpose / reversal copies between kernels).
    x = images.transpose(1, 0, 2, 3, 4).reshape(time * batch, chans, h, w)
    # im2col (glue): (T*B, C*9, H, W) -> (T*B, H*W, C*9), zero-pad K to 32.
    patches = lax.conv_general_dilated_patches(
        x, (KSIZE, KSIZE), (1, 1), "SAME")
    patches = patches.transpose(0, 2, 3, 1).reshape(time * batch, h * w, K_RAW)
    patches = jnp.pad(patches, ((0, 0), (0, 0), (0, K_PAD - K_RAW)))
    patches = patches.astype(jnp.bfloat16)

    # fused conv matmul + swish + AdaptiveAvgPool2d(1): conv activations stay
    # in VMEM; only (T*B, FEAT) bf16 pooled rows are written to HBM.
    embed = conv_pool_features(patches, params["conv_w"], params["conv_b"])

    # --- fused 3-layer biLSTM + AdaptiveAvgPool1d(1) + fc (single kernel) ---
    # TODO(synk): nn.LSTM dropout(p=0.5) between layers skipped (eval mode).
    logits = lstm_stack_pool_fc(
        embed, params["lstm_wih0"], params["lstm_wihr"], params["lstm_whh"],
        params["lstm_b"], params["fc_w"], params["fc_b"],
        hidden=HID, num_layers=NUM_LAYERS, t_len=time, batch=batch,
        num_classes=NUM_CLASSES)
    return logits


# ------------------------------- main ---------------------------------------
if __name__ == "__main__":
    key = jax.random.PRNGKey(0)
    k_img, k_par = jax.random.split(key)
    images = jax.random.normal(k_img, (B, T, C, HW_IMG, HW_IMG), jnp.float32)
    params = init_params(k_par)

    logits = trunc_efficient_lstm_forward(images, params)
    logits = jax.block_until_ready(logits)

    assert logits.shape == (B, NUM_CLASSES), logits.shape
    assert bool(jnp.all(jnp.isfinite(logits)))
    print("KERNEL_OK")
</pallas_src>

<mosaic_0001>
module attributes {stable_mosaic.version = 11 : i64} {
  func.func @conv_pool_kernel(%arg0: i32, %arg1: memref<1x256x32xbf16, #tpu.memory_space<vmem>>, %arg2: memref<32x256xbf16, #tpu.memory_space<vmem>>, %arg3: memref<1x256xf32, #tpu.memory_space<vmem>>, %arg4: memref<1x1x256xbf16, #tpu.memory_space<vmem>>) attributes {dimension_semantics = [#tpu.dimension_semantics<parallel>], iteration_bounds = array<i64: 8>, scalar_prefetch = 0 : i64, scratch_operands = 0 : i64, tpu.core_type = #tpu.core_type<tc>, window_params = [{transform_indices = @transform_0, window_bounds = array<i64: 1, 256, 32>}, {pipeline_mode = #tpu.pipeline_mode<synchronous>, transform_indices = @transform_1, window_bounds = array<i64: 32, 256>}, {pipeline_mode = #tpu.pipeline_mode<synchronous>, transform_indices = @transform_2, window_bounds = array<i64: 1, 256>}, {transform_indices = @transform_3, window_bounds = array<i64: 1, 1, 256>}]} {
    %c0 = arith.constant 0 : index
    %c0_0 = arith.constant 0 : index
    %c0_1 = arith.constant 0 : index
    %0 = vector.load %arg1[%c0, %c0_0, %c0_1] : memref<1x256x32xbf16, #tpu.memory_space<vmem>>, vector<1x256x32xbf16>
    %1 = vector.shape_cast %0 : vector<1x256x32xbf16> to vector<256x32xbf16>
    %c0_2 = arith.constant 0 : index
    %c0_3 = arith.constant 0 : index
    %2 = vector.load %arg2[%c0_2, %c0_3] : memref<32x256xbf16, #tpu.memory_space<vmem>>, vector<32x256xbf16>
    %cst = arith.constant dense<0.000000e+00> : vector<256x256xf32>
    %3 = tpu.matmul %1, %2, %cst {dimension_numbers = #tpu.dot_dimension_numbers<[1], [0], [0], [1], [0, 0, 1, 1], [], []>} : vector<256x32xbf16>, vector<32x256xbf16>, vector<256x256xf32> -> vector<256x256xf32>
    %c0_4 = arith.constant 0 : index
    %c0_5 = arith.constant 0 : index
    %4 = vector.load %arg3[%c0_4, %c0_5] : memref<1x256xf32, #tpu.memory_space<vmem>>, vector<1x256xf32>
    %5 = vector.broadcast %4 : vector<1x256xf32> to vector<256x256xf32>
    %6 = arith.addf %3, %5 : vector<256x256xf32>
    %7 = arith.negf %6 : vector<256x256xf32>
    %8 = math.exp %7 : vector<256x256xf32>
    %cst_6 = arith.constant 1.000000e+00 : f32
    %9 = vector.broadcast %cst_6 : f32 to vector<256x256xf32>
    %10 = arith.addf %9, %8 : vector<256x256xf32>
    %11 = arith.divf %9, %10 : vector<256x256xf32>
    %12 = arith.mulf %6, %11 : vector<256x256xf32>
    %cst_7 = arith.constant dense<0.000000e+00> : vector<256xf32>
    %13 = vector.multi_reduction <add>, %12, %cst_7 [0] : vector<256x256xf32> to vector<256xf32>
    %14 = vector.shape_cast %13 : vector<256xf32> to vector<1x256xf32>
    %cst_8 = arith.constant 2.560000e+02 : f32
    %15 = vector.broadcast %cst_8 : f32 to vector<1x256xf32>
    %16 = arith.divf %14, %15 : vector<1x256xf32>
    %17 = arith.truncf %16 : vector<1x256xf32> to vector<1x256xbf16>
    %c0_9 = arith.constant 0 : index
    %c0_10 = arith.constant 0 : index
    %c0_11 = arith.constant 0 : index
    %18 = vector.load %arg4[%c0_9, %c0_10, %c0_11] : memref<1x1x256xbf16, #tpu.memory_space<vmem>>, vector<1x1x256xbf16>
    %19 = vector.shape_cast %18 : vector<1x1x256xbf16> to vector<1x256xbf16>
    %20 = vector.shape_cast %17 : vector<1x256xbf16> to vector<1x1x256xbf16>
    tpu.vector_store %arg4[%c0_9, %c0_10, %c0_11], %20 {strides = array<i32>} : memref<1x1x256xbf16, #tpu.memory_space<vmem>>, vector<1x1x256xbf16>,
    return
  }
  func.func @transform_0(%arg0: i32) -> (i32, i32, i32) {
    %c0_i32 = arith.constant 0 : i32
    %c0_i32_0 = arith.constant 0 : i32
    %c0_i32_1 = arith.constant 0 : i32
    return %arg0, %c0_i32, %c0_i32_0 : i32, i32, i32
  }
  func.func @transform_1(%arg0: i32) -> (i32, i32) {
    %c0_i32 = arith.constant 0 : i32
    %c0_i32_0 = arith.constant 0 : i32
    %c0_i32_1 = arith.constant 0 : i32
    return %c0_i32, %c0_i32_0 : i32, i32
  }
  func.func @transform_2(%arg0: i32) -> (i32, i32) {
    %c0_i32 = arith.constant 0 : i32
    %c0_i32_0 = arith.constant 0 : i32
    %c0_i32_1 = arith.constant 0 : i32
    return %c0_i32, %c0_i32_0 : i32, i32
  }
  func.func @transform_3(%arg0: i32) -> (i32, i32, i32) {
    %c0_i32 = arith.constant 0 : i32
    %c0_i32_0 = arith.constant 0 : i32
    %c0_i32_1 = arith.constant 0 : i32
    return %arg0, %c0_i32, %c0_i32_0 : i32, i32, i32
  }
}

</mosaic_0001>

<bundles_post_ra>
// kernel: tpu_custom_call.1
= control target key start
LH: loop header
LB: loop body
LE: loop exit
PB: predicated region body
PF: predicated region fallthrough
CT: control target
= control target key end

     0   :  { %s1602_s12 = smov 0   ;;  %s2214_s0 = inlined_call_operand.vmem [shape: bf16[8,256,32], index: 0, kind: input, shape index: {}]   ;;  %s2215_s1 = inlined_call_operand.vmem [shape: bf16[32,256], index: 1, kind: input, shape index: {}]   ;;  %s2216_s2 = inlined_call_operand.vmem [shape: f32[1,256], index: 2, kind: input, shape index: {}]   ;;  %s2217_s3 = inlined_call_operand.vmem [shape: bf16[8,1,256], index: 3, kind: output, shape index: {}]  }
   0x1 LB: > { %s1168_s13 = sadd.s32 4294967295, %s1578_s12   ;;  %p1172_p0 = scmp.ge.s32.totalorder %s1578_s12, 1  ;;  %s1578_s12 = sphi %s1602_s12, %s13_s12  }
   0x2   : > { %p137_p1 = scmp.lt.s32.totalorder %s1578_s12, 9 }
   0x4   : > { %p138_p2 = pnand %p1172_p0, %p137_p1 }
   0x6   : > { %141 = sbr.rel (%p138_p2) target bundleno = 431 (0x1af), region = 32 }
   0xd   : > { %v1294_v0 = vld [vmem:[%s2215_s1 + $0x4] ss:$8 sps:$4 sm:$0xff]   ;;  %p160_p3 = scmp.lt.s32.totalorder %s1168_s13, 7  ;;  %v1296_v1 = vld [vmem:[%s2215_s1] ss:$8 sps:$4 sm:$0xff]   ;;  %v1580_v2 = vmov 0   ;;  %v208_v21 = vlaneseq }
   0xe   : > { %399 = vmatprep.mubr.bf16.mxu0 %v1580_v2  ;;  %479 = vmatprep.mubr.bf16.mxu1 %v1580_v2  ;;  %v1297_v3 = vld [vmem:[%s2215_s1 + $0x14] ss:$8 sps:$4 sm:$0xff]   ;;  %v1299_v4 = vld [vmem:[%s2215_s1 + $0x10] ss:$8 sps:$4 sm:$0xff]   ;;  %vm318_vm0 = vcmask 261120   ;;  %vm1105_vm1 = vcmask 1040384  }
   0xf   : > { %367 = vmatprep.subr.bf16.mxu0 %v1294_v0  ;;  %1280 = vmatprep.subr.bf16.mxu1 %v1294_v0  ;;  %s2274_s13 = smov (!%p160_p3, %s1168_s13), 7  ;;  %v1662_v22 = vshrl.u32 %v208_v21, 7  ;;  %v206_v24 = vld [vmem:[%s2216_s2] sm:$0x3]  ;;  %vm1106_vm2 = vsmask.f32 256 }
  0x10   : > { %368 = vmatpush1.bf16.msra.mxu0 %v1296_v1  ;;  %1282 = vmatpush1.bf16.msra.mxu1 %v1296_v1  ;;  %s1279_s22 = sshll.u32 %s2274_s13, 7  ;;  %s1175_s28 = sshll.u32 %s2274_s13, 1  ;;  %vm1108_vm3 = vcmask 1041409   ;;  %vm1109_vm4 = vsmask.f32 1280  ;;  %vm1107_vm5 = vmand %vm1105_vm1, %vm1106_vm2 }
  0x11   : > { %369 = vmatprep.subr.bf16.mxu0 %v1297_v3  ;;  %1281 = vmatprep.subr.bf16.mxu1 %v1297_v3  ;;  %s1628_s25 = scalar_lea.vmem %s2214_s0, %s1279_s22  ;;  %2231 = vst [vmem:[#allocation2_spill] sm:$0xff] %v1662_v22  ;;  %v210_v23 = vsub.s32 0, %v1662_v22  ;;  %v214_v25 = vsub.s32 1, %v1662_v22  ;;  %s168_s4 = scalar_lea.vmem %s2217_s3, %s1175_s28  ;;  %vm1110_vm6 = vmand %vm1108_vm3, %vm1109_vm4 }
  0x12   : > { %v1300_v5 = vld [vmem:[%s1628_s25] sm:$0xff]   ;;  %v1302_v7 = vld [vmem:[%s1628_s25 + $0x8] sm:$0xff]   ;;  %v1304_v9 = vld [vmem:[%s1628_s25 + $0x10] sm:$0xff]  }
  0x13   : > { %v1301_v6 = vld [vmem:[%s1628_s25 + $0x40] sm:$0xff]   ;;  %v1303_v8 = vld [vmem:[%s1628_s25 + $0x48] sm:$0xff]   ;;  %v1305_v10 = vld [vmem:[%s1628_s25 + $0x50] sm:$0xff]   ;;  %v1669_v26 = vrot.slane %v206_v24, %v210_v23  ;;  %v1671_v27 = vrot.slane %v206_v24, %v214_v25 }
  0x14   : > { %370 = vmatpush1.bf16.msra.mxu0 %v1299_v4  ;;  %1283 = vmatpush1.bf16.msra.mxu1 %v1299_v4  ;;  %v1306_v11 = vld [vmem:[%s1628_s25 + $0x18] sm:$0xff]   ;;  %v1308_v13 = vld [vmem:[%s1628_s25 + $0x20] sm:$0xff]   ;;  %v1310_v15 = vld [vmem:[%s1628_s25 + $0x28] sm:$0xff]  }
  0x15   : > { %v1307_v12 = vld [vmem:[%s1628_s25 + $0x58] sm:$0xff]   ;;  %v1309_v14 = vld [vmem:[%s1628_s25 + $0x60] sm:$0xff]   ;;  %v1311_v16 = vld [vmem:[%s1628_s25 + $0x68] sm:$0xff]  }
  0x16   : > { %v1312_v17 = vld [vmem:[%s1628_s25 + $0x30] sm:$0xff]   ;;  %v1314_v19 = vld [vmem:[%s1628_s25 + $0x38] sm:$0xff]   ;;  %vm1111_vm7 = vmor %vm1110_vm6, %vm1107_vm5 }
  0x17   : > { %1196 = vmatmul.mubr.msk.bf16.vlgmr.msra.gmra.mrb[0].mxu0 %vm318_vm0, %v1300_v5  ;;  %1204 = vmatmul.mubr.msk.bf16.vlgmr.msra.gmra.mrb[0].mxu1 %vm318_vm0, %v1301_v6  ;;  %v1313_v18 = vld [vmem:[%s1628_s25 + $0x70] sm:$0xff]   ;;  %v1315_v20 = vld [vmem:[%s1628_s25 + $0x78] sm:$0xff]  }
  0x18   : > { %409 = vmatprep.mubr.bf16.mxu0 %v1580_v2  ;;  %489 = vmatprep.mubr.bf16.mxu1 %v1580_v2 }
  0x1f   : > { %1197 = vmatmul.mubr.msk.bf16.gmra.mrb[4].mxu0 %vm318_vm0, %v1302_v7  ;;  %1205 = vmatmul.mubr.msk.bf16.gmra.mrb[4].mxu1 %vm318_vm0, %v1303_v8 }
  0x20   : > { %419 = vmatprep.mubr.bf16.mxu0 %v1580_v2  ;;  %499 = vmatprep.mubr.bf16.mxu1 %v1580_v2 }
  0x27   : > { %1198 = vmatmul.mubr.msk.bf16.gmra.mrb[8].mxu0 %vm318_vm0, %v1304_v9  ;;  %1206 = vmatmul.mubr.msk.bf16.gmra.mrb[8].mxu1 %vm318_vm0, %v1305_v10 }
  0x28   : > { %429 = vmatprep.mubr.bf16.mxu0 %v1580_v2  ;;  %509 = vmatprep.mubr.bf16.mxu1 %v1580_v2 }
  0x2f   : > { %1199 = vmatmul.mubr.msk.bf16.gmra.mrb[12].mxu0 %vm318_vm0, %v1306_v11  ;;  %1207 = vmatmul.mubr.msk.bf16.gmra.mrb[12].mxu1 %vm318_vm0, %v1307_v12 }
  0x30   : > { %439 = vmatprep.mubr.bf16.mxu0 %v1580_v2  ;;  %519 = vmatprep.mubr.bf16.mxu1 %v1580_v2 }
  0x37   : > { %1200 = vmatmul.mubr.msk.bf16.gmra.mrb[16].mxu0 %vm318_vm0, %v1308_v13  ;;  %1208 = vmatmul.mubr.msk.bf16.gmra.mrb[16].mxu1 %vm318_vm0, %v1309_v14 }
  0x38   : > { %449 = vmatprep.mubr.bf16.mxu0 %v1580_v2  ;;  %529 = vmatprep.mubr.bf16.mxu1 %v1580_v2 }
  0x3f   : > { %1201 = vmatmul.mubr.msk.bf16.gmra.mrb[20].mxu0 %vm318_vm0, %v1310_v15  ;;  %1209 = vmatmul.mubr.msk.bf16.gmra.mrb[20].mxu1 %vm318_vm0, %v1311_v16 }
  0x40   : > { %459 = vmatprep.mubr.bf16.mxu0 %v1580_v2  ;;  %539 = vmatprep.mubr.bf16.mxu1 %v1580_v2 }
  0x47   : > { %1202 = vmatmul.mubr.msk.bf16.gmra.mrb[24].mxu0 %vm318_vm0, %v1312_v17  ;;  %1210 = vmatmul.mubr.msk.bf16.gmra.mrb[24].mxu1 %vm318_vm0, %v1313_v18 }
  0x48   : > { %469 = vmatprep.mubr.bf16.mxu0 %v1580_v2  ;;  %549 = vmatprep.mubr.bf16.mxu1 %v1580_v2 }
  0x4f   : > { %1203 = vmatmul.mubr.msk.bf16.gmra.mrb[28].mxu0 %vm318_vm0, %v1314_v19  ;;  %1211 = vmatmul.mubr.msk.bf16.gmra.mrb[28].mxu1 %vm318_vm0, %v1315_v20 }
  0xea   : > { %v401_v28 = vpop.f32.mrb[0].mxu0  ;;  %v1673_v29 = vpop.f32.mrb[0].mxu1 }
  0xeb   : > { %v1676_v30 = vadd.f32 %v401_v28, %v1669_v26  ;;  %v403_v31 = vpop.f32.mrb[1].mxu0  ;;  %v1678_v32 = vpop.f32.mrb[1].mxu1 }
  0xec   : > { %v1681_v33 = vadd.f32 %v403_v31, %v1671_v27  ;;  %v405_v34 = vpop.f32.mrb[2].mxu0  ;;  %v1683_v35 = vpop.f32.mrb[2].mxu1 }
  0xed   : > { %v1212_v36 = vmul.f32 -1.442695, %v1676_v30  ;;  %v1687_v37 = vadd.f32 %v405_v34, %v1669_v26  ;;  %v407_v38 = vpop.f32.mrb[3].mxu0  ;;  %v1689_v39 = vpop.f32.mrb[3].mxu1 }
  0xee   : > { %v1213_v40 = vmul.f32 -1.442695, %v1681_v33  ;;  %v1693_v41 = vadd.f32 %v407_v38, %v1671_v27 }
  0xef   : > { %1316 = vpow2.f32 %v1212_v36  ;;  %v1214_v42 = vmul.f32 -1.442695, %v1687_v37 }
  0xf0   : > { %1318 = vpow2.f32 %v1213_v40  ;;  %v1215_v43 = vmul.f32 -1.442695, %v1693_v41 }
  0xf1   : > { %1320 = vpow2.f32 %v1214_v42 }
  0xf2   : > { %1322 = vpow2.f32 %v1215_v43  ;;  %v411_v44 = vpop.f32.mrb[4].mxu0  ;;  %v1697_v45 = vpop.f32.mrb[4].mxu1 }
  0xf3   : > { %v1700_v46 = vadd.f32 %v411_v44, %v1669_v26  ;;  %v413_v47 = vpop.f32.mrb[5].mxu0  ;;  %v1702_v48 = vpop.f32.mrb[5].mxu1 }
  0xf4   : > { %v1705_v49 = vadd.f32 %v413_v47, %v1671_v27  ;;  %v415_v50 = vpop.f32.mrb[6].mxu0  ;;  %v1707_v51 = vpop.f32.mrb[6].mxu1 }
  0xf5   : > { %v1216_v52 = vmul.f32 -1.442695, %v1700_v46  ;;  %v1711_v53 = vadd.f32 %v415_v50, %v1669_v26  ;;  %v417_v54 = vpop.f32.mrb[7].mxu0  ;;  %v1713_v55 = vpop.f32.mrb[7].mxu1 }
  0xf6   : > { %v1217_v56 = vmul.f32 -1.442695, %v1705_v49  ;;  %v1717_v57 = vadd.f32 %v417_v54, %v1671_v27 }
  0xf7   : > { %1324 = vpow2.f32 %v1216_v52  ;;  %v1218_v58 = vmul.f32 -1.442695, %v1711_v53 }
  0xf8   : > { %1326 = vpow2.f32 %v1217_v56  ;;  %v1219_v59 = vmul.f32 -1.442695, %v1717_v57 }
  0xf9   : > { %v1317_v60 = vpop.eup %1316  ;;  %1328 = vpow2.f32 %v1218_v58 }
  0xfa   : > { %v1319_v61 = vpop.eup %1318  ;;  %v752_v62 = vadd.f32 1.0, %v1317_v60  ;;  %1330 = vpow2.f32 %v1219_v59  ;;  %v421_v63 = vpop.f32.mrb[8].mxu0 }
  0xfb   : > { %v1721_v0 = vpop.f32.mrb[8].mxu1  ;;  %v1321_v1 = vpop.eup %1320  ;;  %v753_v2 = vadd.f32 1.0, %v1319_v61  ;;  %v1732_v23 = vadd.f32 %v421_v63, %v1669_v26 }
  0xfc   : > { %v423_v3 = vpop.f32.mrb[9].mxu0  ;;  %v1723_v4 = vpop.f32.mrb[9].mxu1  ;;  %1332 = vrcp.f32 %v752_v62  ;;  %v754_v6 = vadd.f32 1.0, %v1321_v1 }
  0xfd   : > { %v1323_v5 = vpop.eup %1322  ;;  %v425_v7 = vpop.f32.mrb[10].mxu0  ;;  %1334 = vrcp.f32 %v753_v2  ;;  %v1739_v31 = vadd.f32 %v423_v3, %v1671_v27  ;;  %v1220_v50 = vmul.f32 -1.442695, %v1732_v23 }
  0xfe   : > { %v1725_v8 = vpop.f32.mrb[10].mxu1  ;;  %v755_v9 = vadd.f32 1.0, %v1323_v5  ;;  %v427_v10 = vpop.f32.mrb[11].mxu0  ;;  %1336 = vrcp.f32 %v754_v6  ;;  %v1746_v40 = vadd.f32 %v425_v7, %v1669_v26 }
  0xff   : > { %v1727_v11 = vpop.f32.mrb[11].mxu1  ;;  %v1751_v44 = vadd.f32 %v427_v10, %v1671_v27  ;;  %v1221_v58 = vmul.f32 -1.442695, %v1739_v31 }
 0x100   : > { %1338 = vrcp.f32 %v755_v9  ;;  %v1222_v61 = vmul.f32 -1.442695, %v1746_v40 }
 0x101   : > { %v1325_v12 = vpop.eup %1324  ;;  %v1223_v2 = vmul.f32 -1.442695, %v1751_v44 }
 0x102   : > { %v1327_v13 = vpop.eup %1326  ;;  %v756_v14 = vadd.f32 1.0, %v1325_v12  ;;  %v431_v15 = vpop.f32.mrb[12].mxu0 }
 0x103   : > { %v1729_v16 = vpop.f32.mrb[12].mxu1  ;;  %v1329_v17 = vpop.eup %1328  ;;  %v757_v18 = vadd.f32 1.0, %v1327_v13  ;;  %v1770_v5 = vadd.f32 %v431_v15, %v1669_v26 }
 0x104   : > { %v433_v19 = vpop.f32.mrb[13].mxu0  ;;  %v1331_v20 = vpop.eup %1330  ;;  %1340 = vrcp.f32 %v756_v14  ;;  %v758_v21 = vadd.f32 1.0, %v1329_v17 }
 0x105   : > { %v1734_v24 = vpop.f32.mrb[14].mxu0  ;;  %v1736_v25 = vpop.f32.mrb[13].mxu1  ;;  %1342 = vrcp.f32 %v757_v18  ;;  %v759_v28 = vadd.f32 1.0, %v1331_v20  ;;  %v1777_v6 = vadd.f32 %v433_v19, %v1671_v27  ;;  %v1224_v17 = vmul.f32 -1.442695, %v1770_v5 }
 0x106   : > { %v1741_v34 = vpop.f32.mrb[15].mxu0  ;;  %v1743_v36 = vpop.f32.mrb[14].mxu1  ;;  %1344 = vrcp.f32 %v758_v21 }
 0x107   : > { %v1333_v38 = vpop.eup %1332  ;;  %v1748_v42 = vpop.f32.mrb[15].mxu1  ;;  %1346 = vrcp.f32 %v759_v28  ;;  %v1225_v21 = vmul.f32 -1.442695, %v1777_v6 }
 0x108   : > { %v1335_v43 = vpop.eup %1334  ;;  %v944_v54 = vmul.f32 %v1333_v38, %v1676_v30  ;;  %1348 = vpow2.f32 %v1220_v50 }
 0x109   : > { %v1337_v47 = vpop.eup %1336  ;;  %v945_v59 = vmul.f32 %v1335_v43, %v1681_v33  ;;  %1350 = vpow2.f32 %v1221_v58 }
 0x10a   : > { %v1339_v52 = vpop.eup %1338  ;;  %v946_v56 = vmul.f32 %v1337_v47, %v1687_v37  ;;  %v1760_v62 = vpop.f32.mrb[16].mxu0  ;;  %1352 = vpow2.f32 %v1222_v61  ;;  %v1815_v61 = vadd.f32 %v1678_v32, %v1671_v27 }
 0x10b   : > { %v947_v60 = vmul.f32 %v1339_v52, %v1693_v41  ;;  %v1762_v63 = vpop.f32.mrb[16].mxu1  ;;  %v1765_v3 = vpop.f32.mrb[17].mxu0  ;;  %1354 = vpow2.f32 %v1223_v2 }
 0x10c   : > { %v1008_v1 = vadd.f32 %v946_v56, %v944_v54  ;;  %v1767_v30 = vpop.f32.mrb[17].mxu1  ;;  %v1772_v33 = vpop.f32.mrb[18].mxu0  ;;  %1356 = vpow2.f32 %v1224_v17  ;;  %2233 = vst [vmem:[#allocation4_spill] sm:$0xff] %v1815_v61  ;;  %v1245_v32 = vmul.f32 -1.442695, %v1815_v61 }
 0x10d   : > { %v1045_v37 = vadd.f32 %v947_v60, %v945_v59  ;;  %v1774_v41 = vpop.f32.mrb[18].mxu1  ;;  %v1779_v7 = vpop.f32.mrb[19].mxu0  ;;  %1358 = vpow2.f32 %v1225_v21  ;;  %v1811_v59 = vadd.f32 %v1673_v29, %v1669_v26 }
 0x10e   : > { %v1781_v9 = vpop.f32.mrb[19].mxu1  ;;  %v1341_v10 = vpop.eup %1340 }
 0x10f   : > { %v1343_v12 = vpop.eup %1342  ;;  %v948_v13 = vmul.f32 %v1341_v10, %v1700_v46  ;;  %2232 = vst [vmem:[#allocation3_spill] sm:$0xff] %v1811_v59 }
 0x110   : > { %v1345_v14 = vpop.eup %1344  ;;  %v949_v15 = vmul.f32 %v1343_v12, %v1705_v49 }
 0x111   : > { %v1347_v18 = vpop.eup %1346  ;;  %v1009_v20 = vadd.f32 %v1008_v1, %v948_v13  ;;  %v950_v19 = vmul.f32 %v1345_v14, %v1711_v53  ;;  %v1244_v14 = vmul.f32 -1.442695, %v1811_v59 }
 0x112   : > { %v1046_v28 = vadd.f32 %v1045_v37, %v949_v15  ;;  %v951_v38 = vmul.f32 %v1347_v18, %v1717_v57  ;;  %v1789_v43 = vpop.f32.mrb[20].mxu0  ;;  %v1791_v47 = vpop.f32.mrb[20].mxu1  ;;  %v1819_v37 = vadd.f32 %v1683_v35, %v1669_v26  ;;  %v1829_v18 = vadd.f32 %v1734_v24, %v1669_v26 }
 0x113   : > { %v1793_v46 = vadd.f32 %v1009_v20, %v950_v19  ;;  %v1795_v50 = vpop.f32.mrb[21].mxu0  ;;  %v1797_v49 = vpop.f32.mrb[21].mxu1  ;;  %v1836_v19 = vadd.f32 %v1741_v34, %v1671_v27 }
 0x114   : > { %v1799_v52 = vadd.f32 %v1046_v28, %v951_v38  ;;  %v1801_v54 = vpop.f32.mrb[22].mxu0  ;;  %v1803_v53 = vpop.f32.mrb[22].mxu1  ;;  %2234 = vst [vmem:[#allocation5_spill] sm:$0xff] %v1819_v37  ;;  %v1246_v20 = vmul.f32 -1.442695, %v1819_v37  ;;  %v1883_v37 = vadd.f32 %v1779_v7, %v1671_v27 }
 0x115   : > { %v1805_v56 = vpop.f32.mrb[23].mxu0  ;;  %v1807_v57 = vpop.f32.mrb[23].mxu1  ;;  %v1226_v34 = vmul.f32 -1.442695, %v1829_v18 }
 0x116   : > { %v1349_v58 = vpop.eup %1348 }
 0x117   : > { %v1351_v60 = vpop.eup %1350  ;;  %v760_v1 = vadd.f32 1.0, %v1349_v58 }
 0x118   : > { %v1353_v2 = vpop.eup %1352  ;;  %v761_v10 = vadd.f32 1.0, %v1351_v60 }
 0x119   : > { %v1355_v12 = vpop.eup %1354  ;;  %1360 = vrcp.f32 %v760_v1  ;;  %v762_v13 = vadd.f32 1.0, %v1353_v2  ;;  %v1848_v1 = vadd.f32 %v1689_v39, %v1671_v27  ;;  %v1864_v39 = vadd.f32 %v1765_v3, %v1671_v27 }
 0x11a   : > { %1362 = vrcp.f32 %v761_v10  ;;  %v763_v29 = vadd.f32 1.0, %v1355_v12  ;;  %v1822_v15 = vpop.f32.mrb[24].mxu0  ;;  %v1824_v17 = vpop.f32.mrb[24].mxu1  ;;  %v1855_v12 = vadd.f32 %v1697_v45, %v1669_v26 }
 0x11b   : > { %2235 = vst [vmem:[#allocation6_spill] sm:$0xff] %v1824_v17  ;;  %1364 = vrcp.f32 %v762_v13  ;;  %v1831_v35 = vpop.f32.mrb[25].mxu0  ;;  %v1842_v38 = vpop.f32.mrb[25].mxu1  ;;  %2238 = vst [vmem:[#allocation9_spill] sm:$0xff] %v1848_v1  ;;  %v1247_v45 = vmul.f32 -1.442695, %v1848_v1 }
 0x11c   : > { %1366 = vrcp.f32 %v763_v29  ;;  %v1838_v21 = vpop.f32.mrb[26].mxu0  ;;  %2236 = vst [vmem:[#allocation7_spill] sm:$0xff] %v1842_v38  ;;  %v1357_v58 = vpop.eup %1356  ;;  %2240 = vst [vmem:[#allocation11_spill] sm:$0xff] %v1855_v12  ;;  %v1860_v29 = vadd.f32 %v1760_v62, %v1669_v26  ;;  %v1248_v3 = vmul.f32 -1.442695, %v1855_v12 }
 0x11d   : > { %v1840_v28 = vpop.f32.mrb[27].mxu0  ;;  %1368 = vpow2.f32 %v1244_v14  ;;  %v1844_v60 = vpop.f32.mrb[26].mxu1  ;;  %v764_v2 = vadd.f32 1.0, %v1357_v58  ;;  %v1227_v14 = vmul.f32 -1.442695, %v1836_v19 }
 0x11e   : > { %2237 = vst [vmem:[#allocation8_spill] sm:$0xff] %v1844_v60  ;;  %v1359_v24 = vpop.eup %1358  ;;  %1370 = vpow2.f32 %v1245_v32  ;;  %v1851_v10 = vpop.f32.mrb[27].mxu1  ;;  %v1228_v59 = vmul.f32 -1.442695, %v1860_v29  ;;  %v1229_v7 = vmul.f32 -1.442695, %v1864_v39 }
 0x11f   : > { %2239 = vst [vmem:[#allocation10_spill] sm:$0xff] %v1851_v10  ;;  %1372 = vpow2.f32 %v1246_v20  ;;  %v765_v13 = vadd.f32 1.0, %v1359_v24  ;;  %v1873_v24 = vadd.f32 %v1772_v33, %v1669_v26  ;;  %v1231_v60 = vmul.f32 -1.442695, %v1883_v37 }
 0x120   : > { %1374 = vrcp.f32 %v764_v2 }
 0x121   : > { %1376 = vrcp.f32 %v765_v13 }
 0x122   : > { %v1866_v32 = vpop.f32.mrb[28].mxu0  ;;  %v1868_v20 = vpop.f32.mrb[28].mxu1  ;;  %1378 = vpow2.f32 %v1226_v34 }
 0x123   : > { %2241 = vst [vmem:[#allocation12_spill] sm:$0xff] %v1868_v20  ;;  %v1361_v58 = vpop.eup %1360  ;;  %v1875_v2 = vpop.f32.mrb[29].mxu0  ;;  %1380 = vpow2.f32 %v1227_v14 }
 0x124   : > { %v1877_v62 = vpop.f32.mrb[29].mxu1  ;;  %v1363_v13 = vpop.eup %1362  ;;  %v952_v22 = vmul.f32 %v1361_v58, %v1732_v23  ;;  %1382 = vpow2.f32 %v1247_v45 }
 0x125   : > { %2242 = vst [vmem:[#allocation13_spill] sm:$0xff] %v1877_v62  ;;  %v1885_v1 = vpop.f32.mrb[30].mxu0  ;;  %v1887_v34 = vpop.f32.mrb[30].mxu1  ;;  %v953_v61 = vmul.f32 %v1363_v13, %v1739_v31  ;;  %v1230_v31 = vmul.f32 -1.442695, %v1873_v24  ;;  %1384 = vpow2.f32 %v1248_v3 }
 0x126   : > { %2243 = vst [vmem:[#allocation14_spill] sm:$0xff] %v1887_v34  ;;  %v1365_v33 = vpop.eup %1364  ;;  %v1891_v62 = vpop.f32.mrb[31].mxu0  ;;  %v1011_v23 = vadd.f32 %v1793_v46, %v952_v22  ;;  %1386 = vpow2.f32 %v1228_v59 }
 0x127   : > { %v1893_v20 = vpop.f32.mrb[31].mxu1  ;;  %v1367_v12 = vpop.eup %1366  ;;  %v954_v14 = vmul.f32 %v1365_v33, %v1746_v40  ;;  %v1048_v58 = vadd.f32 %v1799_v52, %v953_v61  ;;  %1388 = vpow2.f32 %v1229_v7 }
 0x128   : > { %2244 = vst [vmem:[#allocation15_spill] sm:$0xff] %v1893_v20  ;;  %v955_v34 = vmul.f32 %v1367_v12, %v1751_v44  ;;  %v1369_v13 = vpop.eup %1368  ;;  %1390 = vpow2.f32 %v1230_v31 }
 0x129   : > { %v1012_v10 = vadd.f32 %v1011_v23, %v954_v14  ;;  %v1371_v20 = vpop.eup %1370  ;;  %1392 = vpow2.f32 %v1231_v60  ;;  %v784_v33 = vadd.f32 1.0, %v1369_v13 }
 0x12a   : > { %v1049_v38 = vadd.f32 %v1048_v58, %v955_v34  ;;  %v1373_v22 = vpop.eup %1372  ;;  %v785_v17 = vadd.f32 1.0, %v1371_v20 }
 0x12b   : > { %v1375_v40 = vpop.eup %1374  ;;  %v786_v34 = vadd.f32 1.0, %v1373_v22 }
 0x12c   : > { %v1377_v46 = vpop.eup %1376  ;;  %v956_v45 = vmul.f32 %v1375_v40, %v1770_v5  ;;  %v1906_v5 = vadd.f32 %v1702_v48, %v1671_v27  ;;  %v1914_v40 = vadd.f32 %v1789_v43, %v1669_v26  ;;  %v1928_v43 = vadd.f32 %v1805_v56, %v1671_v27 }
 0x12d   : > { %v1379_v52 = vpop.eup %1378  ;;  %v957_v44 = vmul.f32 %v1377_v46, %v1777_v6  ;;  %v1918_v46 = vadd.f32 %v1795_v50, %v1671_v27  ;;  %v1932_v50 = vadd.f32 %v1713_v55, %v1671_v27  ;;  %v1943_v56 = vadd.f32 %v1723_v4, %v1671_v27 }
 0x12e   : > { %v1381_v61 = vpop.eup %1380  ;;  %v1013_v12 = vadd.f32 %v1012_v10, %v956_v45  ;;  %v766_v3 = vadd.f32 1.0, %v1379_v52  ;;  %v1249_v45 = vmul.f32 -1.442695, %v1906_v5 }
 0x12f   : > { %v1050_v23 = vadd.f32 %v1049_v38, %v957_v44  ;;  %v767_v14 = vadd.f32 1.0, %v1381_v61  ;;  %v1383_v59 = vpop.eup %1382  ;;  %v1910_v38 = vadd.f32 %v1707_v51, %v1669_v26  ;;  %v1923_v51 = vadd.f32 %v1801_v54, %v1669_v26 }
 0x130   : > { %1394 = vrcp.f32 %v766_v3  ;;  %v1385_v7 = vpop.eup %1384  ;;  %v787_v13 = vadd.f32 1.0, %v1383_v59  ;;  %v1232_v61 = vmul.f32 -1.442695, %v1914_v40  ;;  %v1937_v54 = vadd.f32 %v1721_v0, %v1669_v26 }
 0x131   : > { %1396 = vrcp.f32 %v767_v14  ;;  %v1387_v58 = vpop.eup %1386  ;;  %v1250_v52 = vmul.f32 -1.442695, %v1910_v38  ;;  %v1233_v14 = vmul.f32 -1.442695, %v1918_v46  ;;  %v1234_v59 = vmul.f32 -1.442695, %v1923_v51 }
 0x132   : > { %1398 = vrcp.f32 %v784_v33  ;;  %v1389_v31 = vpop.eup %1388  ;;  %v768_v6 = vadd.f32 1.0, %v1387_v58  ;;  %v1951_v0 = vadd.f32 %v1725_v8, %v1669_v26  ;;  %v1966_v8 = vadd.f32 %v1831_v35, %v1671_v27 }
 0x133   : > { %1400 = vrcp.f32 %v785_v17  ;;  %v1391_v60 = vpop.eup %1390  ;;  %v769_v10 = vadd.f32 1.0, %v1389_v31  ;;  %v788_v17 = vadd.f32 1.0, %v1385_v7  ;;  %v1251_v31 = vmul.f32 -1.442695, %v1932_v50 }
 0x134   : > { %1402 = vrcp.f32 %v786_v34  ;;  %v1393_v20 = vpop.eup %1392  ;;  %v770_v22 = vadd.f32 1.0, %v1391_v60  ;;  %v1252_v60 = vmul.f32 -1.442695, %v1937_v54 }
 0x135   : > { %1404 = vrcp.f32 %v768_v6  ;;  %v771_v48 = vadd.f32 1.0, %v1393_v20 }
 0x136   : > { %1406 = vrcp.f32 %v769_v10  ;;  %v1253_v10 = vmul.f32 -1.442695, %v1943_v56 }
 0x137   : > { %1408 = vrcp.f32 %v770_v22  ;;  %v1977_v22 = vadd.f32 %v1840_v28, %v1671_v27 }
 0x138   : > { %1410 = vrcp.f32 %v771_v48 }
 0x139   : > { %1412 = vrcp.f32 %v787_v13 }
 0x13a   : > { %v1395_v44 = vpop.eup %1394  ;;  %1414 = vrcp.f32 %v788_v17  ;;  %v1981_v17 = vadd.f32 %v1727_v11, %v1671_v27 }
 0x13b   : > { %v1397_v3 = vpop.eup %1396  ;;  %v958_v33 = vmul.f32 %v1395_v44, %v1829_v18  ;;  %1416 = vpow2.f32 %v1249_v45  ;;  %v1235_v18 = vmul.f32 -1.442695, %v1928_v43  ;;  %v1237_v44 = vmul.f32 -1.442695, %v1966_v8 }
 0x13c   : > { %v959_v55 = vmul.f32 %v1397_v3, %v1836_v19  ;;  %v1947_v34 = vpop.eup %1398  ;;  %1418 = vpow2.f32 %v1250_v52  ;;  %v1959_v19 = vadd.f32 %v1822_v15, %v1669_v26  ;;  %v1254_v15 = vmul.f32 -1.442695, %v1951_v0 }
 0x13d   : > { %v1014_v7 = vadd.f32 %v1013_v12, %v958_v33  ;;  %v1954_v58 = vpop.eup %1400  ;;  %1420 = vpow2.f32 %v1232_v61 }
 0x13e   : > { %v1051_v4 = vadd.f32 %v1050_v23, %v959_v55  ;;  %v1961_v6 = vpop.eup %1402  ;;  %1422 = vpow2.f32 %v1233_v14  ;;  %v1971_v23 = vadd.f32 %v1838_v21, %v1669_v26  ;;  %v1236_v21 = vmul.f32 -1.442695, %v1959_v19 }
 0x13f   : > { %v1405_v12 = vpop.eup %1404  ;;  %1424 = vpow2.f32 %v1234_v59  ;;  %v1239_v14 = vmul.f32 -1.442695, %v1977_v22 }
 0x140   : > { %v1407_v20 = vpop.eup %1406  ;;  %v960_v13 = vmul.f32 %v1405_v12, %v1860_v29  ;;  %1426 = vpow2.f32 %v1235_v18  ;;  %v1238_v11 = vmul.f32 -1.442695, %v1971_v23 }
 0x141   : > { %v1409_v35 = vpop.eup %1408  ;;  %1428 = vpow2.f32 %v1251_v31  ;;  %v961_v48 = vmul.f32 %v1407_v20, %v1864_v39 }
 0x142   : > { %v1411_v45 = vpop.eup %1410  ;;  %1430 = vpow2.f32 %v1252_v60  ;;  %v1015_v52 = vadd.f32 %v1014_v7, %v960_v13  ;;  %v962_v29 = vmul.f32 %v1409_v35, %v1873_v24  ;;  %v1255_v24 = vmul.f32 -1.442695, %v1981_v17 }
 0x143   : > { %v1987_v61 = vpop.eup %1412  ;;  %1432 = vpow2.f32 %v1253_v10  ;;  %v1052_v28 = vadd.f32 %v1051_v4, %v961_v48  ;;  %v963_v3 = vmul.f32 %v1411_v45, %v1883_v37  ;;  %v2001_v37 = vadd.f32 %v1729_v16, %v1669_v26 }
 0x144   : > { %v1991_v33 = vpop.eup %1414  ;;  %1434 = vpow2.f32 %v1254_v15  ;;  %v1993_v39 = vadd.f32 %v1015_v52, %v962_v29  ;;  %v2005_v4 = vadd.f32 %v1736_v25, %v1671_v27  ;;  %v2009_v10 = vadd.f32 %v1743_v36, %v1669_v26 }
 0x145   : > { %v1417_v55 = vpop.eup %1416  ;;  %v1997_v59 = vadd.f32 %v1052_v28, %v963_v3  ;;  %1436 = vpow2.f32 %v1236_v21  ;;  %v1256_v48 = vmul.f32 -1.442695, %v2001_v37 }
 0x146   : > { %v1419_v7 = vpop.eup %1418  ;;  %1438 = vpow2.f32 %v1237_v44  ;;  %v789_v13 = vadd.f32 1.0, %v1417_v55  ;;  %v1257_v45 = vmul.f32 -1.442695, %v2005_v4  ;;  %v1258_v29 = vmul.f32 -1.442695, %v2009_v10 }
 0x147   : > { %v1421_v18 = vpop.eup %1420  ;;  %1440 = vpow2.f32 %v1238_v11 }
 0x148   : > { %v1423_v31 = vpop.eup %1422  ;;  %v772_v60 = vadd.f32 1.0, %v1421_v18  ;;  %1442 = vpow2.f32 %v1239_v14 }
 0x149   : > { %v1425_v12 = vpop.eup %1424  ;;  %1444 = vpow2.f32 %v1255_v24  ;;  %v773_v20 = vadd.f32 1.0, %v1423_v31  ;;  %v790_v24 = vadd.f32 1.0, %v1419_v7  ;;  %v2016_v31 = vadd.f32 %v1866_v32, %v1669_v26 }
 0x14a   : > { %v1427_v15 = vpop.eup %1426  ;;  %1446 = vrcp.f32 %v772_v60  ;;  %v774_v16 = vadd.f32 1.0, %v1425_v12  ;;  %v2024_v7 = vadd.f32 %v1885_v1, %v1669_v26 }
 0x14b   : > { %v1429_v35 = vpop.eup %1428  ;;  %1448 = vrcp.f32 %v773_v20  ;;  %v775_v21 = vadd.f32 1.0, %v1427_v15  ;;  %v2020_v15 = vadd.f32 %v1875_v2, %v1671_v27  ;;  %v2033_v2 = vadd.f32 %v1748_v42, %v1671_v27 }
 0x14c   : > { %v1431_v25 = vpop.eup %1430  ;;  %1450 = vrcp.f32 %v774_v16  ;;  %v791_v12 = vadd.f32 1.0, %v1429_v35  ;;  %v2029_v35 = vadd.f32 %v1891_v62, %v1671_v27  ;;  %v1240_v1 = vmul.f32 -1.442695, %v2016_v31 }
 0x14d   : > { %v1433_v52 = vpop.eup %1432  ;;  %1452 = vrcp.f32 %v775_v21  ;;  %v792_v16 = vadd.f32 1.0, %v1431_v25 }
 0x14e   : > { %v1435_v36 = vpop.eup %1434  ;;  %1454 = vrcp.f32 %v789_v13  ;;  %v793_v21 = vadd.f32 1.0, %v1433_v52 }
 0x14f   : > { %v1437_v44 = vpop.eup %1436  ;;  %1456 = vpow2.f32 %v1256_v48 }
 0x150   : > { %v1439_v28 = vpop.eup %1438  ;;  %1458 = vpow2.f32 %v1257_v45  ;;  %v776_v3 = vadd.f32 1.0, %v1437_v44  ;;  %v1241_v44 = vmul.f32 -1.442695, %v2020_v15 }
 0x151   : > { %v1441_v11 = vpop.eup %1440  ;;  %1460 = vpow2.f32 %v1258_v29  ;;  %v777_v14 = vadd.f32 1.0, %v1439_v28 }
 0x152   : > { %v1443_v55 = vpop.eup %1442  ;;  %1462 = vrcp.f32 %v776_v3  ;;  %v778_v18 = vadd.f32 1.0, %v1441_v11  ;;  %v1242_v3 = vmul.f32 -1.442695, %v2024_v7  ;;  %v2047_v11 = vadd.f32 %v1762_v63, %v1669_v26 }
 0x153   : > { %v1445_v60 = vpop.eup %1444  ;;  %1464 = vrcp.f32 %v777_v14  ;;  %v779_v20 = vadd.f32 1.0, %v1443_v55  ;;  %v794_v55 = vadd.f32 1.0, %v1435_v36 }
 0x154   : > { %v1447_v13 = vpop.eup %1446  ;;  %1466 = vrcp.f32 %v778_v18  ;;  %v795_v18 = vadd.f32 1.0, %v1445_v60  ;;  %v1260_v36 = vmul.f32 -1.442695, %v2047_v11 }
 0x155   : > { %v1449_v48 = vpop.eup %1448  ;;  %v964_v32 = vmul.f32 %v1447_v13, %v1914_v40  ;;  %1468 = vrcp.f32 %v779_v20  ;;  %v1259_v20 = vmul.f32 -1.442695, %v2033_v2 }
 0x156   : > { %v1451_v45 = vpop.eup %1450  ;;  %1470 = vrcp.f32 %v790_v24  ;;  %v965_v25 = vmul.f32 %v1449_v48, %v1918_v46  ;;  %v2052_v24 = vadd.f32 %v1767_v30, %v1671_v27 }
 0x157   : > { %v1453_v29 = vpop.eup %1452  ;;  %1472 = vrcp.f32 %v791_v12  ;;  %v1017_v52 = vadd.f32 %v1993_v39, %v964_v32  ;;  %v966_v40 = vmul.f32 %v1451_v45, %v1923_v51  ;;  %v1243_v51 = vmul.f32 -1.442695, %v2029_v35 }
 0x158   : > { %v2040_v62 = vpop.eup %1454  ;;  %1474 = vrcp.f32 %v792_v16  ;;  %v1054_v28 = vadd.f32 %v1997_v59, %v965_v25  ;;  %v967_v42 = vmul.f32 %v1453_v29, %v1928_v43  ;;  %v2056_v12 = vadd.f32 %v1774_v41, %v1669_v26 }
 0x159   : > { %v1457_v46 = vpop.eup %1456  ;;  %1476 = vrcp.f32 %v793_v21  ;;  %v1018_v39 = vadd.f32 %v1017_v52, %v966_v40  ;;  %v1261_v48 = vmul.f32 -1.442695, %v2052_v24 }
 0x15a   : > { %v1459_v14 = vpop.eup %1458  ;;  %v1055_v59 = vadd.f32 %v1054_v28, %v967_v42  ;;  %1478 = vpow2.f32 %v1240_v1  ;;  %v1262_v41 = vmul.f32 -1.442695, %v2056_v12  ;;  %v796_v1 = vadd.f32 1.0, %v1457_v46 }
 0x15b   : > { %v1461_v43 = vpop.eup %1460  ;;  %1480 = vpow2.f32 %v1241_v44  ;;  %v797_v40 = vadd.f32 1.0, %v1459_v14  ;;  %v2084_v46 = vadd.f32 %v1791_v47, %v1669_v26  ;;  %v2097_v47 = vadd.f32 %v1807_v57, %v1671_v27 }
 0x15c   : > { %v1463_v63 = vpop.eup %1462  ;;  %1482 = vpow2.f32 %v1242_v3  ;;  %v798_v28 = vadd.f32 1.0, %v1461_v43  ;;  %v2080_v3 = vadd.f32 %v1781_v9, %v1671_v27 }
 0x15d   : > { %v1465_v13 = vpop.eup %1464  ;;  %v968_v16 = vmul.f32 %v1463_v63, %v1959_v19  ;;  %1484 = vpow2.f32 %v1243_v51  ;;  %v2088_v51 = vadd.f32 %v1797_v49, %v1671_v27  ;;  %v1264_v49 = vmul.f32 -1.442695, %v2084_v46 }
 0x15e   : > { %v1467_v30 = vpop.eup %1466  ;;  %1486 = vrcp.f32 %v794_v55  ;;  %v969_v60 = vmul.f32 %v1465_v13, %v1966_v8  ;;  %v2245_v13 = vld [vmem:[#allocation6_spill] sm:$0xff] }
 0x15f   : > { %v1469_v21 = vpop.eup %1468  ;;  %1488 = vrcp.f32 %v795_v18  ;;  %v1019_v32 = vadd.f32 %v1018_v39, %v968_v16  ;;  %v970_v45 = vmul.f32 %v1467_v30, %v1971_v23  ;;  %v1263_v18 = vmul.f32 -1.442695, %v2080_v3 }
 0x160   : > { %v2065_v25 = vpop.eup %1470  ;;  %1490 = vpow2.f32 %v1259_v20  ;;  %v1056_v29 = vadd.f32 %v1055_v59, %v969_v60  ;;  %v971_v19 = vmul.f32 %v1469_v21, %v1977_v22  ;;  %v2092_v59 = vadd.f32 %v1803_v53, %v1669_v26 }
 0x161   : > { %v2068_v52 = vpop.eup %1472  ;;  %1492 = vpow2.f32 %v1260_v36  ;;  %v2070_v44 = vadd.f32 %v1019_v32, %v970_v45  ;;  %v2104_v36 = vadd.f32 %v2245_v13, %v1669_v26  ;;  %v1265_v30 = vmul.f32 -1.442695, %v2088_v51 }
 0x162   : > { %v2072_v8 = vpop.eup %1474  ;;  %1494 = vpow2.f32 %v1261_v48  ;;  %v2074_v42 = vadd.f32 %v1056_v29, %v971_v19  ;;  %v2246_v48 = vld [vmem:[#allocation7_spill] sm:$0xff]  ;;  %v1266_v21 = vmul.f32 -1.442695, %v2092_v59  ;;  %v2250_v29 = vld [vmem:[#allocation10_spill] sm:$0xff] }
 0x163   : > { %v2076_v23 = vpop.eup %1476  ;;  %1496 = vpow2.f32 %v1262_v41  ;;  %v2111_v57 = vadd.f32 %v2246_v48, %v1671_v27  ;;  %v2248_v41 = vld [vmem:[#allocation8_spill] sm:$0xff]  ;;  %v2121_v19 = vadd.f32 %v2250_v29, %v1671_v27  ;;  %v2258_v48 = vld [vmem:[#allocation15_spill] sm:$0xff] }
 0x164   : > { %v1479_v22 = vpop.eup %1478  ;;  %1498 = vrcp.f32 %v796_v1  ;;  %v2116_v32 = vadd.f32 %v2248_v41, %v1669_v26  ;;  %v1267_v1 = vmul.f32 -1.442695, %v2097_v47  ;;  %v2145_v41 = vadd.f32 %v2258_v48, %v1671_v27 }
 0x165   : > { %v1481_v39 = vpop.eup %1480  ;;  %1500 = vrcp.f32 %v797_v40  ;;  %v780_v14 = vadd.f32 1.0, %v1479_v22  ;;  %2247 = vst [vmem:[#allocation6_spill] sm:$0xff] %v2111_v57  ;;  %2251 = vst [vmem:[#allocation8_spill] sm:$0xff] %v2121_v19  ;;  %v2252_v22 = vld [vmem:[#allocation12_spill] sm:$0xff] }
 0x166   : > { %v1483_v55 = vpop.eup %1482  ;;  %1502 = vrcp.f32 %v798_v28  ;;  %v781_v9 = vadd.f32 1.0, %v1481_v39  ;;  %2249 = vst [vmem:[#allocation7_spill] sm:$0xff] %v2116_v32  ;;  %v1268_v28 = vmul.f32 -1.442695, %v2104_v36  ;;  %v2126_v39 = vadd.f32 %v2252_v22, %v1669_v26 }
 0x167   : > { %v1485_v43 = vpop.eup %1484  ;;  %1504 = vrcp.f32 %v780_v14  ;;  %v782_v63 = vadd.f32 1.0, %v1483_v55  ;;  %v1269_v55 = vmul.f32 -1.442695, %v2111_v57  ;;  %v1275_v48 = vmul.f32 -1.442695, %v2145_v41 }
 0x168   : > { %v2099_v20 = vpop.eup %1486  ;;  %1506 = vrcp.f32 %v781_v9  ;;  %v783_v53 = vadd.f32 1.0, %v1485_v43  ;;  %2253 = vst [vmem:[#allocation10_spill] sm:$0xff] %v2126_v39  ;;  %v2254_v9 = vld [vmem:[#allocation13_spill] sm:$0xff] }
 0x169   : > { %v2106_v16 = vpop.eup %1488  ;;  %1508 = vrcp.f32 %v782_v63  ;;  %v2131_v43 = vadd.f32 %v2254_v9, %v1671_v27  ;;  %v1270_v63 = vmul.f32 -1.442695, %v2116_v32 }
 0x16a   : > { %v1491_v60 = vpop.eup %1490  ;;  %1510 = vrcp.f32 %v783_v53 }
 0x16b   : > { %v1493_v45 = vpop.eup %1492  ;;  %1512 = vpow2.f32 %v1263_v18  ;;  %2255 = vst [vmem:[#allocation12_spill] sm:$0xff] %v2131_v43  ;;  %v1273_v9 = vmul.f32 -1.442695, %v2131_v43 }
 0x16c   : > { %v1495_v40 = vpop.eup %1494  ;;  %1514 = vpow2.f32 %v1264_v49  ;;  %v2256_v49 = vld [vmem:[#allocation14_spill] sm:$0xff]  ;;  %v800_v57 = vadd.f32 1.0, %v1493_v45 }
 0x16d   : > { %v1497_v14 = vpop.eup %1496  ;;  %1516 = vpow2.f32 %v1265_v30  ;;  %v2138_v13 = vadd.f32 %v2256_v49, %v1669_v26  ;;  %v1271_v30 = vmul.f32 -1.442695, %v2121_v19  ;;  %2259 = vst [vmem:[#allocation14_spill] sm:$0xff] %v2145_v41 }
 0x16e   : > { %v2133_v18 = vpop.eup %1498  ;;  %1518 = vpow2.f32 %v1266_v21  ;;  %v1272_v21 = vmul.f32 -1.442695, %v2126_v39 }
 0x16f   : > { %2257 = vst [vmem:[#allocation13_spill] sm:$0xff] %v2138_v13  ;;  %v2140_v53 = vpop.eup %1500  ;;  %1520 = vpow2.f32 %v1267_v1  ;;  %v1274_v1 = vmul.f32 -1.442695, %v2138_v13  ;;  %v2261_v13 = vld [vmem:[#allocation4_spill] sm:$0xff] }
 0x170   : > { %v2147_v29 = vpop.eup %1502  ;;  %1522 = vpow2.f32 %v1268_v28  ;;  %v799_v28 = vadd.f32 1.0, %v1491_v60 }
 0x171   : > { %v1505_v22 = vpop.eup %1504  ;;  %1524 = vpow2.f32 %v1269_v55 }
 0x172   : > { %v1507_v26 = vpop.eup %1506  ;;  %1526 = vpow2.f32 %v1270_v63  ;;  %v972_v49 = vmul.f32 %v1505_v22, %v2016_v31 }
 0x173   : > { %v1509_v19 = vpop.eup %1508  ;;  %1528 = vpow2.f32 %v1271_v30  ;;  %v973_v27 = vmul.f32 %v1507_v26, %v2020_v15  ;;  %v2260_v30 = vld [vmem:[#allocation3_spill] sm:$0xff]  ;;  %v801_v26 = vadd.f32 1.0, %v1495_v40 }
 0x174   : > { %v1511_v32 = vpop.eup %1510  ;;  %v1021_v39 = vadd.f32 %v2070_v44, %v972_v49  ;;  %v974_v55 = vmul.f32 %v1509_v19, %v2024_v7  ;;  %1530 = vpow2.f32 %v1272_v21  ;;  %v976_v15 = vmul.f32 %v1947_v34, %v2260_v30  ;;  %v2262_v21 = vld [vmem:[#allocation5_spill] sm:$0xff] }
 0x175   : > { %v1513_v43 = vpop.eup %1512  ;;  %v1058_v63 = vadd.f32 %v2074_v42, %v973_v27  ;;  %v975_v31 = vmul.f32 %v1511_v32, %v2029_v35  ;;  %1532 = vpow2.f32 %v1273_v9  ;;  %v977_v44 = vmul.f32 %v1954_v58, %v2261_v13  ;;  %v2263_v49 = vld [vmem:[#allocation9_spill] sm:$0xff]  ;;  %v2264_v27 = vld [vmem:[#allocation11_spill] sm:$0xff] }
 0x176   : > { %v1515_v22 = vpop.eup %1514  ;;  %v1022_v41 = vadd.f32 %v1021_v39, %v974_v55  ;;  %1534 = vpow2.f32 %v1274_v1  ;;  %v802_v7 = vadd.f32 1.0, %v1497_v14  ;;  %v978_v42 = vmul.f32 %v1961_v6, %v2262_v21 }
 0x177   : > { %v1517_v60 = vpop.eup %1516  ;;  %v1059_v19 = vadd.f32 %v1058_v63, %v975_v31  ;;  %1536 = vpow2.f32 %v1275_v48  ;;  %v803_v35 = vadd.f32 1.0, %v1513_v43  ;;  %v979_v34 = vmul.f32 %v1987_v61, %v2263_v49 }
 0x178   : > { %v1519_v45 = vpop.eup %1518  ;;  %1538 = vrcp.f32 %v799_v28  ;;  %v1023_v32 = vadd.f32 %v1022_v41, %v976_v15  ;;  %v804_v40 = vadd.f32 1.0, %v1515_v22  ;;  %v980_v58 = vmul.f32 %v1991_v33, %v2264_v27 }
 0x179   : > { %v1521_v9 = vpop.eup %1520  ;;  %1540 = vrcp.f32 %v800_v57  ;;  %v1060_v39 = vadd.f32 %v1059_v19, %v977_v44  ;;  %v805_v14 = vadd.f32 1.0, %v1517_v60  ;;  %v981_v6 = vmul.f32 %v2040_v62, %v1906_v5 }
 0x17a   : > { %v1523_v1 = vpop.eup %1522  ;;  %1542 = vrcp.f32 %v801_v26  ;;  %v1024_v13 = vadd.f32 %v1023_v32, %v978_v42  ;;  %v806_v43 = vadd.f32 1.0, %v1519_v45  ;;  %v982_v61 = vmul.f32 %v2065_v25, %v1910_v38 }
 0x17b   : > { %v1525_v48 = vpop.eup %1524  ;;  %1544 = vrcp.f32 %v802_v7  ;;  %v1061_v41 = vadd.f32 %v1060_v39, %v979_v34  ;;  %v807_v57 = vadd.f32 1.0, %v1521_v9  ;;  %v983_v33 = vmul.f32 %v2068_v52, %v1932_v50 }
 0x17c   : > { %v1527_v28 = vpop.eup %1526  ;;  %1546 = vrcp.f32 %v803_v35  ;;  %v1025_v55 = vadd.f32 %v1024_v13, %v980_v58  ;;  %v808_v31 = vadd.f32 1.0, %v1523_v1  ;;  %v984_v5 = vmul.f32 %v2072_v8, %v1937_v54 }
 0x17d   : > { %v1529_v63 = vpop.eup %1528  ;;  %1548 = vrcp.f32 %v804_v40  ;;  %v1062_v22 = vadd.f32 %v1061_v41, %v981_v6  ;;  %v809_v62 = vadd.f32 1.0, %v1525_v48  ;;  %v985_v38 = vmul.f32 %v2076_v23, %v1943_v56 }
 0x17e   : > { %v1531_v30 = vpop.eup %1530  ;;  %1550 = vrcp.f32 %v805_v14  ;;  %v1026_v15 = vadd.f32 %v1025_v55, %v982_v61  ;;  %v810_v25 = vadd.f32 1.0, %v1527_v28  ;;  %v986_v50 = vmul.f32 %v2099_v20, %v1951_v0 }
 0x17f   : > { %v1533_v26 = vpop.eup %1532  ;;  %1552 = vrcp.f32 %v806_v43  ;;  %v1063_v60 = vadd.f32 %v1062_v22, %v983_v33  ;;  %v811_v52 = vadd.f32 1.0, %v1529_v63  ;;  %v987_v54 = vmul.f32 %v2106_v16, %v1981_v17 }
 0x180   : > { %v1535_v44 = vpop.eup %1534  ;;  %1554 = vrcp.f32 %v807_v57  ;;  %v1027_v7 = vadd.f32 %v1026_v15, %v984_v5  ;;  %v812_v45 = vadd.f32 1.0, %v1531_v30  ;;  %v988_v56 = vmul.f32 %v2133_v18, %v2001_v37  ;;  %v2265_v30 = vld [vmem:[#allocation6_spill] sm:$0xff]  ;;  %v2266_v15 = vld [vmem:[#allocation7_spill] sm:$0xff] }
 0x181   : > { %v1537_v19 = vpop.eup %1536  ;;  %1556 = vrcp.f32 %v808_v31  ;;  %v1064_v8 = vadd.f32 %v1063_v60, %v985_v38  ;;  %v813_v42 = vadd.f32 1.0, %v1533_v26  ;;  %v989_v0 = vmul.f32 %v2140_v53, %v2005_v4 }
 0x182   : > { %v1539_v21 = vpop.eup %1538  ;;  %1558 = vrcp.f32 %v809_v62  ;;  %v1028_v23 = vadd.f32 %v1027_v7, %v986_v50  ;;  %v814_v32 = vadd.f32 1.0, %v1535_v44  ;;  %v990_v17 = vmul.f32 %v2147_v29, %v2009_v10  ;;  %v2268_v50 = vld [vmem:[#allocation10_spill] sm:$0xff]  ;;  %v2269_v7 = vld [vmem:[#allocation12_spill] sm:$0xff] }
 0x183   : > { %v1541_v35 = vpop.eup %1540  ;;  %1560 = vrcp.f32 %v810_v25  ;;  %v1065_v20 = vadd.f32 %v1064_v8, %v987_v54  ;;  %v815_v49 = vadd.f32 1.0, %v1537_v19  ;;  %v991_v37 = vmul.f32 %v1539_v21, %v2033_v2  ;;  %v2267_v25 = vld [vmem:[#allocation8_spill] sm:$0xff]  ;;  %v2270_v8 = vld [vmem:[#allocation13_spill] sm:$0xff] }
 0x184   : > { %v1543_v9 = vpop.eup %1542  ;;  %1562 = vrcp.f32 %v811_v52  ;;  %v1029_v16 = vadd.f32 %v1028_v23, %v988_v56  ;;  %v992_v39 = vmul.f32 %v1541_v35, %v2047_v11  ;;  %v2271_v56 = vld [vmem:[#allocation14_spill] sm:$0xff] }
 0x185   : > { %v1545_v34 = vpop.eup %1544  ;;  %v1066_v18 = vadd.f32 %v1065_v20, %v989_v0  ;;  %1564 = vrcp.f32 %v812_v45  ;;  %v993_v53 = vmul.f32 %v1543_v9, %v2052_v24 }
 0x186   : > { %v1547_v40 = vpop.eup %1546  ;;  %v1030_v1 = vadd.f32 %v1029_v16, %v990_v17  ;;  %1566 = vrcp.f32 %v813_v42  ;;  %v994_v10 = vmul.f32 %v1545_v34, %v2056_v12 }
 0x187   : > { %v1549_v4 = vpop.eup %1548  ;;  %v1067_v27 = vadd.f32 %v1066_v18, %v991_v37  ;;  %1568 = vrcp.f32 %v814_v32  ;;  %v995_v2 = vmul.f32 %v1547_v40, %v2080_v3 }
 0x188   : > { %v1551_v58 = vpop.eup %1550  ;;  %v1031_v29 = vadd.f32 %v1030_v1, %v992_v39  ;;  %1570 = vrcp.f32 %v815_v49  ;;  %v996_v6 = vmul.f32 %v1549_v4, %v2084_v46  ;;  %v1581_v49 = vmov 1966171168  }
 0x189   : > { %v1553_v14 = vpop.eup %1552  ;;  %v1068_v13 = vadd.f32 %v1067_v27, %v993_v53  ;;  %v997_v41 = vmul.f32 %v1551_v58, %v2088_v51  ;;  %v1091_v34 = vunpack.c.l.s4 %v1581_v49 }
 0x18a   : > { %v1555_v48 = vpop.eup %1554  ;;  %v1032_v11 = vadd.f32 %v1031_v29, %v994_v10  ;;  %v998_v61 = vmul.f32 %v1553_v14, %v2092_v59  ;;  %v2272_v10 = vld [vmem:[#allocation2_spill] sm:$0xff] }
 0x18b   : > { %v1557_v43 = vpop.eup %1556  ;;  %v1069_v28 = vadd.f32 %v1068_v13, %v995_v2  ;;  %v999_v12 = vmul.f32 %v1555_v48, %v2097_v47  ;;  %v1092_v1 = vunpack.c.0.s8 %v1091_v34  ;;  %v1112_v13 = vld [vmem:[%s168_s4] sm:$0x3] }
 0x18c   : > { %v1559_v24 = vpop.eup %1558  ;;  %v1033_v57 = vadd.f32 %v1032_v11, %v996_v6  ;;  %v1000_v3 = vmul.f32 %v1557_v43, %v2104_v36 }
 0x18d   : > { %v1561_v55 = vpop.eup %1560  ;;  %v1070_v63 = vadd.f32 %v1069_v28, %v997_v41  ;;  %v1001_v46 = vmul.f32 %v1559_v24, %v2265_v30  ;;  %v1095_v29 = vsub.s32 %v1092_v1, %v2272_v10 }
 0x18e   : > { %v1563_v33 = vpop.eup %1562  ;;  %v1034_v31 = vadd.f32 %v1033_v57, %v998_v61  ;;  %v1002_v51 = vmul.f32 %v1561_v55, %v2266_v15 }
 0x18f   : > { %v1565_v22 = vpop.eup %1564  ;;  %v1071_v5 = vadd.f32 %v1070_v63, %v999_v12  ;;  %v1003_v59 = vmul.f32 %v1563_v33, %v2267_v25 }
 0x190   : > { %v1567_v62 = vpop.eup %1566  ;;  %v1035_v26 = vadd.f32 %v1034_v31, %v1000_v3  ;;  %v1004_v47 = vmul.f32 %v1565_v22, %v2268_v50 }
 0x191   : > { %v1569_v38 = vpop.eup %1568  ;;  %v1072_v60 = vadd.f32 %v1071_v5, %v1001_v46  ;;  %v1005_v19 = vmul.f32 %v1567_v62, %v2269_v7 }
 0x192   : > { %v1571_v44 = vpop.eup %1570  ;;  %v1036_v52 = vadd.f32 %v1035_v26, %v1002_v51  ;;  %v1006_v45 = vmul.f32 %v1569_v38, %v2270_v8 }
 0x193   : > { %v1073_v36 = vadd.f32 %v1072_v60, %v1003_v59  ;;  %v1007_v23 = vmul.f32 %v1571_v44, %v2271_v56 }
 0x194   : > { %v1037_v54 = vadd.f32 %v1036_v52, %v1004_v47 }
 0x195   : > { %v1074_v21 = vadd.f32 %v1073_v36, %v1005_v19 }
 0x196   : > { %v1038_v42 = vadd.f32 %v1037_v54, %v1006_v45 }
 0x197   : > { %v1075_v35 = vadd.f32 %v1074_v21, %v1007_v23 }
 0x198   : > { %v1039_v0 = vrot.slane %v1038_v42, 4 }
 0x199   : > { %v1076_v20 = vrot.slane %v1075_v35, 4 }
 0x19a   : > { %v1040_v32 = vadd.f32 %v1039_v0, %v1038_v42 }
 0x19b   : > { %v1077_v9 = vadd.f32 %v1076_v20, %v1075_v35 }
 0x19c   : > { %v1041_v17 = vrot.slane %v1040_v32, 2 }
 0x19d   : > { %v1078_v16 = vrot.slane %v1077_v9, 2 }
 0x19e   : > { %v1042_v37 = vadd.f32 %v1041_v17, %v1040_v32 }
 0x19f   : > { %v1079_v18 = vadd.f32 %v1078_v16, %v1077_v9 }
 0x1a0   : > { %v1043_v40 = vrot.slane %v1042_v37, 1 }
 0x1a1   : > { %v1080_v39 = vrot.slane %v1079_v18, 1 }
 0x1a2   : > { %v1044_v4 = vadd.f32 %v1043_v40, %v1042_v37 }
 0x1a3   : > { %v1081_v53 = vadd.f32 %v1080_v39, %v1079_v18 }
 0x1a4   : > { %v1083_v27 = vmul.f32 0.00390625, %v1044_v4 }
 0x1a5   : > { %v1084_v58 = vmul.f32 0.00390625, %v1081_v53 }
 0x1a7   : > { %v1276_v14 = vpack.c.bf16 %v1084_v58, %v1083_v27 }
 0x1a9   : > { %v1096_v2 = vrot.slane %v1276_v14, %v1095_v29 }
 0x1ab   : > { %v1103_v48 = vrot.slane %v1096_v2, %v1095_v29 }
 0x1ad   : > { %v1113_v6 = vsel %vm1111_vm7, %v1103_v48, %v1112_v13 }
 0x1ae   : > { %1114 = vst [vmem:[%s168_s4] sm:$0x3] %v1113_v6 }
 0x1af PF: > { %s13_s12 = sadd.s32 1, %s1578_s12  }
 0x1b0   : > { %p10_p4 = scmp.ge.s32.totalorder %s13_s12, 10  }
 0x1b2   :  { %12 = sbr.rel (!%p10_p4) target bundleno = 1 (0x1), region = 62 }

</bundles_post_ra>
